<compile_context>
chip_gen: v6e
topology: v6e:2x2x1
jax: 0.10.0
libtpu: 0.0.40
codegen_flags: <defaults>
</compile_context>

<pallas_src>
import functools

import jax
import jax.numpy as jnp
from jax import lax
from jax.experimental import pallas as pl
from jax.experimental.pallas import tpu as pltpu


def _round_up(x, m):
    return ((x + m - 1) // m) * m


def _sce_kernel(cls_ref, soft_ref, gt_ref, sum_ref, cnt_ref, *,
                nclass, temp, channel_sum, n_pixels, tile, n_inner,
                need_pix_mask):
    i = pl.program_id(2)

    @pl.when(i == 0)
    def _():
        sum_ref[...] = jnp.zeros_like(sum_ref)
        cnt_ref[...] = jnp.zeros_like(cnt_ref)

    cls = cls_ref[...].astype(jnp.float32)     # (C, S, 128)
    soft = soft_ref[...].astype(jnp.float32)   # (C, S, 128)
    gt = gt_ref[...]                           # (S, 128) int32

    px = gt.shape                              # (S, 128)
    ch = lax.broadcasted_iota(jnp.int32, cls.shape, 0)

    # Ragged-tail mask (only emitted when the pixel extent is not tile-aligned):
    # lanes past the true pixel count hold garbage and must be excluded by select.
    if need_pix_mask:
        blk = pl.program_id(1) * n_inner + i
        pix = (blk * tile
               + lax.broadcasted_iota(jnp.int32, px, 0) * 128
               + lax.broadcasted_iota(jnp.int32, px, 1))
        valid = jnp.logical_and(gt != 255, pix < n_pixels)
    else:
        valid = gt != 255

    # One shared channel-max feeds soft2hard (first argmax) and the softmax shift.
    smax = jnp.max(soft, axis=0)                                        # (S,128)
    soft2hard = jnp.min(jnp.where(soft == smax, ch, nclass), axis=0)    # (S,128)
    false_idx = gt != soft2hard

    # Smoothed one-hot label (ignored pixels scattered to class 0, masked later).
    gt_c = jnp.where(gt == 255, 0, gt)
    onehot = jnp.where(ch == gt_c, jnp.float32(0.95),
                       jnp.float32(0.05 / nclass))                      # (C,S,128)

    zs = soft - smax
    zc = cls - jnp.max(cls, axis=0)
    if temp != 1.0:                       # fold temperature at trace time
        inv_t = jnp.float32(1.0 / temp)
        zs = zs * inv_t
        zc = zc * inv_t

    # t_prob = softmax(soft / T): the max element of es is exp(0) == 1 exactly,
    # so top1 == 1/sum(es); soft2hard doubles as argmax(t_prob) (softmax is
    # monotone), saving extra reductions.
    es = jnp.exp(zs)
    inv_sum_es = 1.0 / jnp.sum(es, axis=0)                              # (S,128)
    t_prob = es * inv_sum_es
    es2 = jnp.max(jnp.where(ch == soft2hard, -jnp.inf, es), axis=0)
    t_conf = (1.0 - es2) * inv_sum_es                                   # top1-top2

    tmp_label = t_prob * t_conf + onehot * (1.0 - t_conf)
    t_final = jnp.where(false_idx, tmp_label, t_prob)

    # log_softmax(cls / T) over channels.
    log_p = zc - jnp.log(jnp.sum(jnp.exp(zc), axis=0))

    # Clamp inside the log only: guards 0*log(0) -> NaN when a prob underflows.
    h_soft = t_final * (jnp.log(jnp.maximum(t_final, 1e-30)) - log_p)   # (C,S,128)
    h_total = jnp.sum(h_soft, axis=0)                                   # (S,128)
    if not channel_sum:
        h_total = h_total * jnp.float32(1.0 / nclass)

    # Dense elementwise accumulation (pure VPU); collapsed in the wrapper.
    sum_ref[...] += jnp.where(valid, h_total, jnp.float32(0.0))
    cnt_ref[...] += valid.astype(jnp.float32)


def sce_loss_pallas(cls_score, gt_semantic_seg, soft_label, *,
                    loss_weight=1.0, temp=1.0, channel_sum=False, tile=16384):
    N, C, H, W = cls_score.shape
    # TODO(synk): bilinear F.interpolate path for mismatched soft_label shapes.
    assert soft_label.shape == cls_score.shape
    HW = H * W
    HWp = _round_up(HW, 128)
    R = HWp // 128

    # Free reshapes only -- no transpose of the two big tensors.  Callers may
    # pass bf16 logits (halves HBM traffic on v5e/v6e); kernel upcasts to f32.
    cls2 = cls_score.reshape(N, C, HW)
    soft2 = soft_label.astype(cls_score.dtype).reshape(N, C, HW)
    gt2 = gt_semantic_seg.reshape(N, HW).astype(jnp.int32)

    if HWp != HW:   # rare non-128-aligned spatial extent
        pad = HWp - HW
        cls2 = jnp.pad(cls2, ((0, 0), (0, 0), (0, pad)))
        soft2 = jnp.pad(soft2, ((0, 0), (0, 0), (0, pad)))
        gt2 = jnp.pad(gt2, ((0, 0), (0, pad)), constant_values=255)

    cls4 = cls2.reshape(N, C, R, 128)
    soft4 = soft2.reshape(N, C, R, 128)
    gt3 = gt2.reshape(N, R, 128)

    # Generation-aware VMEM budget: ~48 MiB on 128 MiB parts (v5e/v6e), ~24 MiB
    # on v7x (64 MiB per TC).  Conservative 64 MiB fallback if the query fails.
    try:
        vmem_cap = int(getattr(pltpu.get_tpu_info(), "vmem_capacity_bytes", 0))
        if vmem_cap <= 0:
            vmem_cap = 64 << 20
    except Exception:
        vmem_cap = 64 << 20
    vmem_budget = (vmem_cap * 3) // 8

    # Per-pixel VMEM bytes: double-buffered inputs (2 tensors x 2 bufs x C) +
    # ~14 live (C,S,128) f32 temporaries + (S,128) temps/accumulators/gt.
    in_isz = jnp.dtype(cls_score.dtype).itemsize
    per_pixel = 4 * C * in_isz + (14 * C + 20) * 4
    max_tile_budget = max(128, vmem_budget // per_pixel)

    # Big lane tiles amortize the ~0.35us/step pipeline overhead and give long
    # contiguous DMA rows per channel; tile is a multiple of 1024 so the sublane
    # block dim (tile // 128) is a multiple of 8 (or the block spans the full
    # pixel extent).
    want = min(int(tile), max_tile_budget)
    if want >= HWp or HWp <= 1024:
        tile = HWp
        S = R
    else:
        tile = max(1024, (want // 1024) * 1024)
        S = tile // 128
    n_tiles = pl.cdiv(R, S)

    # v7x has 2 TensorCores: when the batch axis can't be split evenly, add a
    # parallel split of the pixel-tile axis (per-split accumulator slabs).
    split = 2 if (N % 2 == 1 and n_tiles % 2 == 0) else 1
    n_inner = n_tiles // split

    need_pix_mask = (HW != HWp) or (R % S != 0)

    vmem_limit = int(min(vmem_cap - (4 << 20),
                         max(vmem_budget, tile * per_pixel) + (16 << 20)))

    kernel = functools.partial(
        _sce_kernel, nclass=C, temp=float(temp), channel_sum=bool(channel_sum),
        n_pixels=HW, tile=tile, n_inner=n_inner, need_pix_mask=need_pix_mask)

    sums, cnts = pl.pallas_call(
        kernel,
        out_shape=(jax.ShapeDtypeStruct((N, split, S, 128), jnp.float32),
                   jax.ShapeDtypeStruct((N, split, S, 128), jnp.float32)),
        grid=(N, split, n_inner),
        in_specs=[
            pl.BlockSpec((None, C, S, 128),
                         lambda n, s, i: (n, 0, s * n_inner + i, 0)),
            pl.BlockSpec((None, C, S, 128),
                         lambda n, s, i: (n, 0, s * n_inner + i, 0)),
            pl.BlockSpec((None, S, 128),
                         lambda n, s, i: (n, s * n_inner + i, 0)),
        ],
        out_specs=(
            pl.BlockSpec((None, None, S, 128), lambda n, s, i: (n, s, 0, 0)),
            pl.BlockSpec((None, None, S, 128), lambda n, s, i: (n, s, 0, 0)),
        ),
        compiler_params=pltpu.CompilerParams(
            dimension_semantics=("parallel", "parallel", "arbitrary"),
            vmem_limit_bytes=vmem_limit),
    )(cls4, soft4, gt3)

    ssum = jnp.sum(sums)
    cnt = jnp.sum(cnts)
    # no valid pixel: sum is 0 -> loss is 0 (matches h_soft_total.mean() * 0)
    return jnp.float32(loss_weight) * ssum / jnp.maximum(cnt, 1.0)


def sce_loss_ref(cls_score, gt, soft, *, loss_weight=1.0, T=1.0, channel_sum=False):
    """Pure-JAX reference mirroring the PyTorch forward."""
    N, C, H, W = cls_score.shape
    valid = gt != 255                                     # (N,H,W)
    soft2hard = jnp.argmax(soft, axis=1)                  # (N,H,W)
    false_idx = (gt != soft2hard)[:, None]                # (N,1,H,W)
    gt_c = jnp.where(gt == 255, 0, gt)
    onehot = jnp.where(jnp.arange(C)[None, :, None, None] == gt_c[:, None],
                       0.95, 0.05 / C).astype(cls_score.dtype)
    t_prob = jax.nn.softmax(soft / T, axis=1)
    t_sort = jnp.sort(t_prob, axis=1)[:, ::-1]
    t_conf = t_sort[:, 0:1] - t_sort[:, 1:2]
    tmp_label = t_prob * t_conf + onehot * (1.0 - t_conf)
    t_prob = jnp.where(false_idx, tmp_label, t_prob)
    log_p = jax.nn.log_softmax(cls_score / T, axis=1)
    h = t_prob * (jnp.log(t_prob) - log_p)
    h_tot = h.sum(1) if channel_sum else h.mean(1)
    cnt = valid.sum()
    return loss_weight * jnp.where(
        cnt > 0, (h_tot * valid).sum() / jnp.maximum(cnt, 1), 0.0)


if __name__ == "__main__":
    # case 1: default SCELoss params, single tile, aligned (no ragged masking)
    N, C, H, W = 2, 4, 16, 16
    k1, k2, k3 = jax.random.split(jax.random.PRNGKey(0), 3)
    cls_score = jax.random.normal(k1, (N, C, H, W), dtype=jnp.float32)
    soft_label = jax.random.normal(k2, (N, C, H, W), dtype=jnp.float32)
    raw = jax.random.randint(k3, (N, H, W), 0, C + 1, dtype=jnp.int32)
    gt = jnp.where(raw == C, 255, raw)

    loss = jax.block_until_ready(sce_loss_pallas(cls_score, gt, soft_label))
    ref = sce_loss_ref(cls_score, gt, soft_label)
    assert jnp.allclose(loss, ref, rtol=1e-4, atol=1e-5), (loss, ref)

    # case 2: multi-tile grid, partial last sublane tile, temp != 1, channel_sum
    N2, C2, H2, W2 = 2, 5, 48, 48
    k4, k5, k6 = jax.random.split(jax.random.PRNGKey(1), 3)
    cls_b = jax.random.normal(k4, (N2, C2, H2, W2), dtype=jnp.float32)
    soft_b = jax.random.normal(k5, (N2, C2, H2, W2), dtype=jnp.float32)
    raw_b = jax.random.randint(k6, (N2, H2, W2), 0, C2 + 1, dtype=jnp.int32)
    gt_b = jnp.where(raw_b == C2, 255, raw_b)

    loss2 = jax.block_until_ready(
        sce_loss_pallas(cls_b, gt_b, soft_b, loss_weight=0.5, temp=2.0,
                        channel_sum=True, tile=1024))
    ref2 = sce_loss_ref(cls_b, gt_b, soft_b, loss_weight=0.5, T=2.0,
                        channel_sum=True)
    assert jnp.allclose(loss2, ref2, rtol=1e-4, atol=1e-5), (loss2, ref2)

    # case 3: N=1 (odd) -> dual-TC pixel-axis split path, partial last tile
    N3, C3, H3, W3 = 1, 4, 64, 56
    k7, k8, k9 = jax.random.split(jax.random.PRNGKey(2), 3)
    cls_c = jax.random.normal(k7, (N3, C3, H3, W3), dtype=jnp.float32)
    soft_c = jax.random.normal(k8, (N3, C3, H3, W3), dtype=jnp.float32)
    raw_c = jax.random.randint(k9, (N3, H3, W3), 0, C3 + 1, dtype=jnp.int32)
    gt_c = jnp.where(raw_c == C3, 255, raw_c)

    loss3 = jax.block_until_ready(
        sce_loss_pallas(cls_c, gt_c, soft_c, loss_weight=2.0, tile=1024))
    ref3 = sce_loss_ref(cls_c, gt_c, soft_c, loss_weight=2.0)
    assert jnp.allclose(loss3, ref3, rtol=1e-4, atol=1e-5), (loss3, ref3)

    # case 4: spatial extent not a multiple of 128 (lane-padding path)
    N4, C4, H4, W4 = 2, 3, 10, 10
    ka, kb, kc = jax.random.split(jax.random.PRNGKey(3), 3)
    cls_d = jax.random.normal(ka, (N4, C4, H4, W4), dtype=jnp.float32)
    soft_d = jax.random.normal(kb, (N4, C4, H4, W4), dtype=jnp.float32)
    raw_d = jax.random.randint(kc, (N4, H4, W4), 0, C4 + 1, dtype=jnp.int32)
    gt_d = jnp.where(raw_d == C4, 255, raw_d)

    loss4 = jax.block_until_ready(sce_loss_pallas(cls_d, gt_d, soft_d))
    ref4 = sce_loss_ref(cls_d, gt_d, soft_d)
    assert jnp.allclose(loss4, ref4, rtol=1e-4, atol=1e-5), (loss4, ref4)

    print("KERNEL_OK")
</pallas_src>

<mosaic_0001>
module attributes {stable_mosaic.version = 11 : i64} {
  func.func @_sce_kernel(%arg0: i32, %arg1: i32, %arg2: i32, %arg3: memref<1x4x2x128xf32, #tpu.memory_space<vmem>>, %arg4: memref<1x4x2x128xf32, #tpu.memory_space<vmem>>, %arg5: memref<1x2x128xi32, #tpu.memory_space<vmem>>, %arg6: memref<1x1x2x128xf32, #tpu.memory_space<vmem>>, %arg7: memref<1x1x2x128xf32, #tpu.memory_space<vmem>>) attributes {dimension_semantics = [#tpu.dimension_semantics<parallel>, #tpu.dimension_semantics<parallel>, #tpu.dimension_semantics<arbitrary>], iteration_bounds = array<i64: 2, 1, 1>, scalar_prefetch = 0 : i64, scratch_operands = 0 : i64, tpu.core_type = #tpu.core_type<tc>, window_params = [{transform_indices = @transform_0, window_bounds = array<i64: 1, 4, 2, 128>}, {transform_indices = @transform_1, window_bounds = array<i64: 1, 4, 2, 128>}, {transform_indices = @transform_2, window_bounds = array<i64: 1, 2, 128>}, {transform_indices = @transform_3, window_bounds = array<i64: 1, 1, 2, 128>}, {transform_indices = @transform_4, window_bounds = array<i64: 1, 1, 2, 128>}]} {
    %c0_i32 = arith.constant 0 : i32
    %0 = arith.cmpi eq, %arg2, %c0_i32 : i32
    %1 = arith.extui %0 : i1 to i32
    %c0_i32_0 = arith.constant 0 : i32
    %2 = arith.cmpi ne, %1, %c0_i32_0 : i32
    scf.if %2 {
      %cst_44 = arith.constant 0.000000e+00 : f32
      %95 = vector.broadcast %cst_44 : f32 to vector<2x128xf32>
      %c0_45 = arith.constant 0 : index
      %c0_46 = arith.constant 0 : index
      %c0_47 = arith.constant 0 : index
      %c0_48 = arith.constant 0 : index
      %96 = vector.load %arg6[%c0_45, %c0_46, %c0_47, %c0_48] : memref<1x1x2x128xf32, #tpu.memory_space<vmem>>, vector<1x1x2x128xf32>
      %97 = vector.shape_cast %96 : vector<1x1x2x128xf32> to vector<2x128xf32>
      %98 = vector.shape_cast %95 : vector<2x128xf32> to vector<1x1x2x128xf32>
      tpu.vector_store %arg6[%c0_45, %c0_46, %c0_47, %c0_48], %98 {strides = array<i32>} : memref<1x1x2x128xf32, #tpu.memory_space<vmem>>, vector<1x1x2x128xf32>,
      %cst_49 = arith.constant 0.000000e+00 : f32
      %99 = vector.broadcast %cst_49 : f32 to vector<2x128xf32>
      %c0_50 = arith.constant 0 : index
      %c0_51 = arith.constant 0 : index
      %c0_52 = arith.constant 0 : index
      %c0_53 = arith.constant 0 : index
      %100 = vector.load %arg7[%c0_50, %c0_51, %c0_52, %c0_53] : memref<1x1x2x128xf32, #tpu.memory_space<vmem>>, vector<1x1x2x128xf32>
      %101 = vector.shape_cast %100 : vector<1x1x2x128xf32> to vector<2x128xf32>
      %102 = vector.shape_cast %99 : vector<2x128xf32> to vector<1x1x2x128xf32>
      tpu.vector_store %arg7[%c0_50, %c0_51, %c0_52, %c0_53], %102 {strides = array<i32>} : memref<1x1x2x128xf32, #tpu.memory_space<vmem>>, vector<1x1x2x128xf32>,
    } else {
    }
    %c0 = arith.constant 0 : index
    %c0_1 = arith.constant 0 : index
    %c0_2 = arith.constant 0 : index
    %c0_3 = arith.constant 0 : index
    %3 = vector.load %arg3[%c0, %c0_1, %c0_2, %c0_3] : memref<1x4x2x128xf32, #tpu.memory_space<vmem>>, vector<1x4x2x128xf32>
    %4 = vector.shape_cast %3 : vector<1x4x2x128xf32> to vector<4x2x128xf32>
    %c0_4 = arith.constant 0 : index
    %c0_5 = arith.constant 0 : index
    %c0_6 = arith.constant 0 : index
    %c0_7 = arith.constant 0 : index
    %5 = vector.load %arg4[%c0_4, %c0_5, %c0_6, %c0_7] : memref<1x4x2x128xf32, #tpu.memory_space<vmem>>, vector<1x4x2x128xf32>
    %6 = vector.shape_cast %5 : vector<1x4x2x128xf32> to vector<4x2x128xf32>
    %c0_8 = arith.constant 0 : index
    %c0_9 = arith.constant 0 : index
    %c0_10 = arith.constant 0 : index
    %7 = vector.load %arg5[%c0_8, %c0_9, %c0_10] : memref<1x2x128xi32, #tpu.memory_space<vmem>>, vector<1x2x128xi32>
    %8 = vector.shape_cast %7 : vector<1x2x128xi32> to vector<2x128xi32>
    %9 = tpu.iota {dimensions = array<i32: 0>} : vector<4x2x128xi32>
    %c255_i32 = arith.constant 255 : i32
    %10 = vector.broadcast %c255_i32 : i32 to vector<2x128xi32>
    %11 = arith.cmpi ne, %8, %10 : vector<2x128xi32>
    %cst = arith.constant dense<0xFF800000> : vector<2x128xf32>
    %12 = vector.multi_reduction <maximumf>, %6, %cst [0] : vector<4x2x128xf32> to vector<2x128xf32>
    %13 = vector.shape_cast %12 : vector<2x128xf32> to vector<1x2x128xf32>
    %14 = vector.broadcast %13 : vector<1x2x128xf32> to vector<4x2x128xf32>
    %15 = arith.cmpf oeq, %6, %14 : vector<4x2x128xf32>
    %c4_i32 = arith.constant 4 : i32
    %16 = vector.broadcast %c4_i32 : i32 to vector<4x2x128xi32>
    %17 = arith.select %15, %9, %16 : vector<4x2x128xi1>, vector<4x2x128xi32>
    %cst_11 = arith.constant dense<2147483647> : vector<2x128xi32>
    %18 = vector.multi_reduction <minsi>, %17, %cst_11 [0] : vector<4x2x128xi32> to vector<2x128xi32>
    %19 = arith.cmpi ne, %8, %18 : vector<2x128xi32>
    %c255_i32_12 = arith.constant 255 : i32
    %20 = vector.broadcast %c255_i32_12 : i32 to vector<2x128xi32>
    %21 = arith.cmpi eq, %8, %20 : vector<2x128xi32>
    %c0_i32_13 = arith.constant 0 : i32
    %22 = vector.broadcast %c0_i32_13 : i32 to vector<2x128xi32>
    %23 = arith.select %21, %22, %8 : vector<2x128xi1>, vector<2x128xi32>
    %24 = vector.shape_cast %23 : vector<2x128xi32> to vector<1x2x128xi32>
    %25 = vector.broadcast %24 : vector<1x2x128xi32> to vector<4x2x128xi32>
    %26 = arith.cmpi eq, %9, %25 : vector<4x2x128xi32>
    %cst_14 = arith.constant 0.949999988 : f32
    %cst_15 = arith.constant 1.250000e-02 : f32
    %27 = vector.broadcast %cst_14 : f32 to vector<4x2x128xf32>
    %28 = vector.broadcast %cst_15 : f32 to vector<4x2x128xf32>
    %29 = arith.select %26, %27, %28 : vector<4x2x128xi1>, vector<4x2x128xf32>
    %30 = vector.shape_cast %12 : vector<2x128xf32> to vector<1x2x128xf32>
    %31 = vector.broadcast %30 : vector<1x2x128xf32> to vector<4x2x128xf32>
    %32 = arith.subf %6, %31 : vector<4x2x128xf32>
    %cst_16 = arith.constant dense<0xFF800000> : vector<2x128xf32>
    %33 = vector.multi_reduction <maximumf>, %4, %cst_16 [0] : vector<4x2x128xf32> to vector<2x128xf32>
    %34 = vector.shape_cast %33 : vector<2x128xf32> to vector<1x2x128xf32>
    %35 = vector.broadcast %34 : vector<1x2x128xf32> to vector<4x2x128xf32>
    %36 = arith.subf %4, %35 : vector<4x2x128xf32>
    %37 = math.exp %32 : vector<4x2x128xf32>
    %cst_17 = arith.constant dense<0.000000e+00> : vector<2x128xf32>
    %38 = vector.multi_reduction <add>, %37, %cst_17 [0] : vector<4x2x128xf32> to vector<2x128xf32>
    %cst_18 = arith.constant 1.000000e+00 : f32
    %39 = vector.broadcast %cst_18 : f32 to vector<2x128xf32>
    %40 = arith.divf %39, %38 : vector<2x128xf32>
    %41 = vector.shape_cast %40 : vector<2x128xf32> to vector<1x2x128xf32>
    %42 = vector.broadcast %41 : vector<1x2x128xf32> to vector<4x2x128xf32>
    %43 = arith.mulf %37, %42 : vector<4x2x128xf32>
    %44 = vector.shape_cast %18 : vector<2x128xi32> to vector<1x2x128xi32>
    %45 = vector.broadcast %44 : vector<1x2x128xi32> to vector<4x2x128xi32>
    %46 = arith.cmpi eq, %9, %45 : vector<4x2x128xi32>
    %cst_19 = arith.constant 0xFF800000 : f32
    %47 = vector.broadcast %cst_19 : f32 to vector<4x2x128xf32>
    %48 = arith.select %46, %47, %37 : vector<4x2x128xi1>, vector<4x2x128xf32>
    %cst_20 = arith.constant dense<0xFF800000> : vector<2x128xf32>
    %49 = vector.multi_reduction <maximumf>, %48, %cst_20 [0] : vector<4x2x128xf32> to vector<2x128xf32>
    %cst_21 = arith.constant 1.000000e+00 : f32
    %50 = vector.broadcast %cst_21 : f32 to vector<2x128xf32>
    %51 = arith.subf %50, %49 : vector<2x128xf32>
    %52 = arith.mulf %51, %40 : vector<2x128xf32>
    %53 = vector.shape_cast %52 : vector<2x128xf32> to vector<1x2x128xf32>
    %54 = vector.broadcast %53 : vector<1x2x128xf32> to vector<4x2x128xf32>
    %55 = arith.mulf %43, %54 : vector<4x2x128xf32>
    %cst_22 = arith.constant 1.000000e+00 : f32
    %56 = vector.broadcast %cst_22 : f32 to vector<2x128xf32>
    %57 = arith.subf %56, %52 : vector<2x128xf32>
    %58 = vector.shape_cast %57 : vector<2x128xf32> to vector<1x2x128xf32>
    %59 = vector.broadcast %58 : vector<1x2x128xf32> to vector<4x2x128xf32>
    %60 = arith.mulf %29, %59 : vector<4x2x128xf32>
    %61 = arith.addf %55, %60 : vector<4x2x128xf32>
    %62 = vector.shape_cast %19 : vector<2x128xi1> to vector<1x2x128xi1>
    %63 = vector.broadcast %62 : vector<1x2x128xi1> to vector<4x2x128xi1>
    %64 = arith.select %63, %61, %43 : vector<4x2x128xi1>, vector<4x2x128xf32>
    %65 = math.exp %36 : vector<4x2x128xf32>
    %cst_23 = arith.constant dense<0.000000e+00> : vector<2x128xf32>
    %66 = vector.multi_reduction <add>, %65, %cst_23 [0] : vector<4x2x128xf32> to vector<2x128xf32>
    %67 = math.log %66 : vector<2x128xf32>
    %68 = vector.shape_cast %67 : vector<2x128xf32> to vector<1x2x128xf32>
    %69 = vector.broadcast %68 : vector<1x2x128xf32> to vector<4x2x128xf32>
    %70 = arith.subf %36, %69 : vector<4x2x128xf32>
    %cst_24 = arith.constant 1.000000e-30 : f32
    %71 = vector.broadcast %cst_24 : f32 to vector<4x2x128xf32>
    %72 = arith.maximumf %64, %71 : vector<4x2x128xf32>
    %73 = math.log %72 : vector<4x2x128xf32>
    %74 = arith.subf %73, %70 : vector<4x2x128xf32>
    %75 = arith.mulf %64, %74 : vector<4x2x128xf32>
    %cst_25 = arith.constant dense<0.000000e+00> : vector<2x128xf32>
    %76 = vector.multi_reduction <add>, %75, %cst_25 [0] : vector<4x2x128xf32> to vector<2x128xf32>
    %cst_26 = arith.constant 2.500000e-01 : f32
    %77 = vector.broadcast %cst_26 : f32 to vector<2x128xf32>
    %78 = arith.mulf %76, %77 : vector<2x128xf32>
    %c0_27 = arith.constant 0 : index
    %c0_28 = arith.constant 0 : index
    %c0_29 = arith.constant 0 : index
    %c0_30 = arith.constant 0 : index
    %79 = vector.load %arg6[%c0_27, %c0_28, %c0_29, %c0_30] : memref<1x1x2x128xf32, #tpu.memory_space<vmem>>, vector<1x1x2x128xf32>
    %80 = vector.shape_cast %79 : vector<1x1x2x128xf32> to vector<2x128xf32>
    %cst_31 = arith.constant 0.000000e+00 : f32
    %81 = vector.broadcast %cst_31 : f32 to vector<2x128xf32>
    %82 = arith.select %11, %78, %81 : vector<2x128xi1>, vector<2x128xf32>
    %83 = arith.addf %80, %82 : vector<2x128xf32>
    %c0_32 = arith.constant 0 : index
    %c0_33 = arith.constant 0 : index
    %c0_34 = arith.constant 0 : index
    %c0_35 = arith.constant 0 : index
    %84 = vector.load %arg6[%c0_32, %c0_33, %c0_34, %c0_35] : memref<1x1x2x128xf32, #tpu.memory_space<vmem>>, vector<1x1x2x128xf32>
    %85 = vector.shape_cast %84 : vector<1x1x2x128xf32> to vector<2x128xf32>
    %86 = vector.shape_cast %83 : vector<2x128xf32> to vector<1x1x2x128xf32>
    tpu.vector_store %arg6[%c0_32, %c0_33, %c0_34, %c0_35], %86 {strides = array<i32>} : memref<1x1x2x128xf32, #tpu.memory_space<vmem>>, vector<1x1x2x128xf32>,
    %c0_36 = arith.constant 0 : index
    %c0_37 = arith.constant 0 : index
    %c0_38 = arith.constant 0 : index
    %c0_39 = arith.constant 0 : index
    %87 = vector.load %arg7[%c0_36, %c0_37, %c0_38, %c0_39] : memref<1x1x2x128xf32, #tpu.memory_space<vmem>>, vector<1x1x2x128xf32>
    %88 = vector.shape_cast %87 : vector<1x1x2x128xf32> to vector<2x128xf32>
    %89 = arith.extui %11 : vector<2x128xi1> to vector<2x128xi32>
    %90 = arith.sitofp %89 : vector<2x128xi32> to vector<2x128xf32>
    %91 = arith.addf %88, %90 : vector<2x128xf32>
    %c0_40 = arith.constant 0 : index
    %c0_41 = arith.constant 0 : index
    %c0_42 = arith.constant 0 : index
    %c0_43 = arith.constant 0 : index
    %92 = vector.load %arg7[%c0_40, %c0_41, %c0_42, %c0_43] : memref<1x1x2x128xf32, #tpu.memory_space<vmem>>, vector<1x1x2x128xf32>
    %93 = vector.shape_cast %92 : vector<1x1x2x128xf32> to vector<2x128xf32>
    %94 = vector.shape_cast %91 : vector<2x128xf32> to vector<1x1x2x128xf32>
    tpu.vector_store %arg7[%c0_40, %c0_41, %c0_42, %c0_43], %94 {strides = array<i32>} : memref<1x1x2x128xf32, #tpu.memory_space<vmem>>, vector<1x1x2x128xf32>,
    return
  }
  func.func @transform_0(%arg0: i32, %arg1: i32, %arg2: i32) -> (i32, i32, i32, i32) {
    %c1_i32 = arith.constant 1 : i32
    %0 = arith.muli %arg1, %c1_i32 : i32
    %1 = arith.addi %0, %arg2 : i32
    %c0_i32 = arith.constant 0 : i32
    %c0_i32_0 = arith.constant 0 : i32
    %c0_i32_1 = arith.constant 0 : i32
    return %arg0, %c0_i32, %1, %c0_i32_0 : i32, i32, i32, i32
  }
  func.func @transform_1(%arg0: i32, %arg1: i32, %arg2: i32) -> (i32, i32, i32, i32) {
    %c1_i32 = arith.constant 1 : i32
    %0 = arith.muli %arg1, %c1_i32 : i32
    %1 = arith.addi %0, %arg2 : i32
    %c0_i32 = arith.constant 0 : i32
    %c0_i32_0 = arith.constant 0 : i32
    %c0_i32_1 = arith.constant 0 : i32
    return %arg0, %c0_i32, %1, %c0_i32_0 : i32, i32, i32, i32
  }
  func.func @transform_2(%arg0: i32, %arg1: i32, %arg2: i32) -> (i32, i32, i32) {
    %c1_i32 = arith.constant 1 : i32
    %0 = arith.muli %arg1, %c1_i32 : i32
    %1 = arith.addi %0, %arg2 : i32
    %c0_i32 = arith.constant 0 : i32
    %c0_i32_0 = arith.constant 0 : i32
    return %arg0, %1, %c0_i32 : i32, i32, i32
  }
  func.func @transform_3(%arg0: i32, %arg1: i32, %arg2: i32) -> (i32, i32, i32, i32) {
    %c0_i32 = arith.constant 0 : i32
    %c0_i32_0 = arith.constant 0 : i32
    %c0_i32_1 = arith.constant 0 : i32
    return %arg0, %arg1, %c0_i32, %c0_i32_0 : i32, i32, i32, i32
  }
  func.func @transform_4(%arg0: i32, %arg1: i32, %arg2: i32) -> (i32, i32, i32, i32) {
    %c0_i32 = arith.constant 0 : i32
    %c0_i32_0 = arith.constant 0 : i32
    %c0_i32_1 = arith.constant 0 : i32
    return %arg0, %arg1, %c0_i32, %c0_i32_0 : i32, i32, i32, i32
  }
}

</mosaic_0001>

<bundles_post_ra>
// kernel: tpu_custom_call.1
= control target key start
LH: loop header
LB: loop body
LE: loop exit
PB: predicated region body
PF: predicated region fallthrough
CT: control target
= control target key end

     0   :  { %s1405_s0 = inlined_call_operand.hbm [shape: f32[2,4,2,128], index: 0, kind: input, shape index: {}]   ;;  %s1406_s1 = inlined_call_operand.hbm [shape: f32[2,4,2,128], index: 1, kind: input, shape index: {}]   ;;  %s1407_s2 = inlined_call_operand.hbm [shape: s32[2,2,128], index: 2, kind: input, shape index: {}]   ;;  %s1408_s3 = inlined_call_operand.hbm [shape: f32[2,1,2,128], index: 3, kind: output, shape index: {0}]   ;;  %s1409_s4 = inlined_call_operand.hbm [shape: f32[2,1,2,128], index: 4, kind: output, shape index: {1}]  }
   0x1   :  { %1414 = sst [smem:[#allocation19_spill]] %s1406_s1 }
   0x2   :  { %10 = vsyncpa [#allocation3], 0 }
   0x3   :  { %12 = vsyncpa [#allocation3 + $0x1], 0 }
   0x4   :  { %13 = vsyncpa [#allocation6], 0 }
   0x5   :  { %15 = vsyncpa [#allocation6 + $0x1], 0 }
   0x6   :  { %16 = vsyncpa [#allocation4], 0 }
   0x7   :  { %18 = vsyncpa [#allocation4 + $0x1], 0 }
   0x8   :  { %19 = vsyncpa [#allocation10], 0 }
   0x9   :  { %21 = vsyncpa [#allocation10 + $0x1], 0  ;;  %s1100_s15 = smov 0   ;;  %s1102_s16 = smov 0  }
   0xa   :  { %s1104_s17 = smov 0   ;;  %s1106_s18 = smov 0  }
   0xb   :  { %s1108_s19 = smov 0   ;;  %s1110_s20 = smov 0  }
   0xc LB: > { %1415 = sst [smem:[#allocation15_spill]] %s1051_s17  ;;  %s1131_s21 = sadd.s32 4294967295, %s1063_s20   ;;  %s1063_s20 = sphi %s1110_s20, %s27_s20   ;;  %s1059_s19 = sphi %s1108_s19, %s1434_s19   ;;  %s1055_s18 = sphi %s1106_s18, %s1433_s18   ;;  %s1051_s17 = sphi %s1104_s17, %s1429_s17   ;;  %s1047_s16 = sphi %s1102_s16, %s1432_s16   ;;  %s1043_s15 = sphi %s1100_s15, %s1431_s15  }
   0xd   : > { %1416 = sst [smem:[#allocation16_spill]] %s1063_s20  ;;  %s729_s22 = sadd.s32 4294967294, %s1063_s20  }
   0xe   : > { %s46_s23 = sadd.s32 1, %s1059_s19  ;;  %s57_s24 = sadd.s32 1, %s1051_s17 }
   0xf   : > { %p48_p0 = scmp.ge.s32.totalorder %s46_s23, 2  ;;  %p64_p1 = scmp.ne.s32.totalorder %s1051_s17, %s1047_s16 }
  0x10   : > { %p65_p2 = scmp.eq.s32.totalorder %s1063_s20, 0  ;;  %p70_p3 = scmp.ne.s32.totalorder %s1047_s16, %s1043_s15 }
  0x11   : > { %s1436_s23 = smov (%p48_p0, %s46_s23), 0  ;;  %p71_p5 = scmp.eq.s32.totalorder %s1131_s21, 0 }
  0x12   : > { %1417 = sst [smem:[#allocation17_spill]] %s1436_s23  ;;  %p1143_p4 = por %p65_p2, %p64_p1 }
  0x13   : > { %s52_s26 = ssub.s32 %s1059_s19, %s1436_s23  ;;  %p156_p6 = scmp.eq.s32.totalorder %s1131_s21, 1 }
  0x14   : > { %p55_p7 = scmp.eq.s32.totalorder %s52_s26, 0  ;;  %p1151_p8 = por %p71_p5, %p70_p3 }
  0x15   : > { %p1155_p9 = por %p156_p6, %p64_p1  ;;  %p162_p10 = scmp.eq.s32.totalorder %s729_s22, 1 }
  0x16   : > { %s1160_s29 = scalar_select %p55_p7, %s1051_s17, %s57_s24  }
  0x17   : > { %p1162_p11 = por %p162_p10, %p70_p3  ;;  %p782_p13 = scmp.lt.s32.totalorder %s1063_s20, 2 }
  0x18   : > { %1421 = sst [smem:[#allocation18_spill]] %s1160_s29  ;;  %s1169_s5 = sand.u32 1, %s1051_s17  }
  0x19   : > { %s732_s6 = sshll.u32 %s1169_s5, 3  ;;  %s753_s7 = sshll.u32 %s1059_s19, 7 }
  0x1a   : > { %p1175_p0 = pnand %p782_p13, %p1143_p4  ;;  %s233_s9 = sand.u32 1, %s1063_s20  }
  0x1b   : > { %s1424_s1 = sld [smem:[#allocation19_spill]]  ;;  %s237_s13 = scalar_lea.vmem [#allocation5], %s732_s6 }
  0x1c   : > { %s246_s14 = sshll.u32 %s237_s13, 4  ;;  %p740_p1 = scmp.ge.s32.totalorder %s1063_s20, 1  ;;  %s247_s14 = int_to_ptr.vmem [resolvable:$true] %s246_s14 }
  0x1d   : > { %p274_p2 = scmp.lt.s32.totalorder %s1063_s20, 3  ;;  %s1189_s22 = scalar_lea.sflag [#allocation6], %s233_s9 }
  0x1e   : > { %p867_p3 = pneg %p1175_p0  ;;  %s878_s24 = scalar_lea.vmem %s247_s14, 128 }
  0x1f   : > { %p879_p4 = scmp.ne.s32.totalorder %s247_s14, %s878_s24  ;;  %s1065_s25 = smov [#allocation5]  }
  0x20   : > { %s883_s26 = sshll.u32 %s1065_s25, 4  ;;  %s884_s26 = int_to_ptr.vmem [resolvable:$false] %s883_s26 }
  0x21   : > { %s245_s12 = scalar_lea.hbm %s1424_s1, %s753_s7  ;;  %p881_p5 = pnand %p879_p4, %p867_p3 }
  0x22   : > { %s885_s10 = scalar_lea.vmem %s884_s26, 256  ;;  %p886_p7 = scmp.lt.s32.totalorder %s247_s14, %s884_s26 }
  0x23   : > { %p882_p6 = pneg %p881_p5  ;;  %p887_p10 = scmp.lt.s32.totalorder %s885_s10, %s878_s24 }
  0x25   : > { %p888_p13 = por %p887_p10, %p886_p7 }
  0x27   : > { %p889_p12 = pnand %p888_p13, %p882_p6 }
  0x29   : > { %892 = shalt.err (!%p889_p12)
}
  0x2a   : > { %s1066_s11 = smov 32   ;;  %s1067_s9 = smov 2  }
  0x2b   : > { %771 = dma.hbm_to_vmem [thread:$0]  (!%p1175_p0), %s245_s12, 128, %s247_s14, %s1189_s22, %s1066_s11, %s1066_s11, %s1067_s9  }
  0x2c   : > { %p1203_p4 = pnand %p740_p1, %p274_p2  ;;  %s222_s26 = scalar_lea.hbm %s1405_s0, %s753_s7 }
  0x2d   : > { %s214_s10 = scalar_lea.vmem [#allocation2], %s732_s6  ;;  %s738_s23 = sshll.u32 %s1169_s5, 1 }
  0x2e   : > { %s223_s1 = sshll.u32 %s214_s10, 4  ;;  %s211_s29 = scalar_lea.sflag [#allocation3], %s1169_s5  ;;  %s224_s1 = int_to_ptr.vmem [resolvable:$true] %s223_s1 }
  0x2f   : > { %s906_s17 = scalar_lea.vmem %s224_s1, 128  ;;  %s1068_s12 = smov [#allocation2]  }
  0x30   : > { %p907_p12 = scmp.ne.s32.totalorder %s224_s1, %s906_s17  ;;  %s911_s14 = sshll.u32 %s1068_s12, 4  ;;  %s912_s14 = int_to_ptr.vmem [resolvable:$false] %s911_s14 }
  0x31   : > { %s913_s20 = scalar_lea.vmem %s912_s14, 256  ;;  %p914_p2 = scmp.lt.s32.totalorder %s224_s1, %s912_s14 }
  0x32   : > { %p909_p5 = pnand %p907_p12, %p867_p3  ;;  %p915_p6 = scmp.lt.s32.totalorder %s913_s20, %s906_s17 }
  0x34   : > { %p910_p1 = pneg %p909_p5  ;;  %p916_p7 = por %p915_p6, %p914_p2 }
  0x36   : > { %p917_p10 = pnand %p916_p7, %p910_p1 }
  0x38   : > { %920 = shalt.err (!%p917_p10)
}
  0x39   : > { %768 = dma.hbm_to_vmem [thread:$0]  (!%p1175_p0), %s222_s26, 128, %s224_s1, %s211_s29, %s1066_s11, %s1066_s11, %s1067_s9  }
  0x3a   : > { %s739_s5 = sshll.u32 %s1059_s19, 5  ;;  %s260_s6 = scalar_lea.vmem [#allocation7], %s738_s23 }
  0x3b   : > { %s269_s7 = sshll.u32 %s260_s6, 4  ;;  %s267_s10 = scalar_lea.hbm %s1407_s2, %s739_s5  ;;  %s270_s7 = int_to_ptr.vmem [resolvable:$true] %s269_s7 }
  0x3c   : > { %s934_s12 = scalar_lea.vmem %s270_s7, 32  ;;  %s1069_s17 = smov [#allocation7]  }
  0x3d   : > { %p935_p13 = scmp.ne.s32.totalorder %s270_s7, %s934_s12  ;;  %s939_s20 = sshll.u32 %s1069_s17, 4  ;;  %s940_s20 = int_to_ptr.vmem [resolvable:$false] %s939_s20 }
  0x3e   : > { %s941_s14 = scalar_lea.vmem %s940_s20, 64  ;;  %p942_p1 = scmp.lt.s32.totalorder %s270_s7, %s940_s20 }
  0x3f   : > { %p937_p12 = pnand %p935_p13, %p867_p3  ;;  %p943_p2 = scmp.lt.s32.totalorder %s941_s14, %s934_s12 }
  0x41   : > { %p938_p5 = pneg %p937_p12  ;;  %p944_p6 = por %p943_p2, %p942_p1 }
  0x43   : > { %p945_p7 = pnand %p944_p6, %p938_p5 }
  0x45   : > { %948 = shalt.err (!%p945_p7)
}
  0x46   : > { %774 = dma.hbm_to_vmem [thread:$0]  (!%p1175_p0), %s267_s10, 32, %s270_s7, %s1189_s22  }
  0x47   : > { %278 = sbr.rel (%p1203_p4) target bundleno = 200 (0xc8), region = 32  ;;  %s1234_s1 = sand.u32 (!%p1203_p4), 1, %s1047_s16  }
  0x48   : > { %s741_s23 = sshll.u32 (!%p1203_p4), %s1234_s1, 3  ;;  %s281_s29 = scalar_lea.sflag (!%p1203_p4), [#allocation3], %s1234_s1 }
  0x49   : > { %s284_s11 = scalar_lea.vmem (!%p1203_p4), [#allocation2], %s741_s23 }
  0x4c   : > { %1026 = dma.done.wait (%p1151_p8), %s281_s29, 128  }
  0x4d   : > { %1028 = vsyncadd (%p1151_p8), %s281_s29, 4294967168  ;;  %s289_s8 = sand.u32 1, %s1131_s21   ;;  %s293_s9 = scalar_lea.vmem [#allocation5], %s741_s23 }
  0x4e   : > { %s290_s22 = scalar_lea.sflag [#allocation6], %s289_s8 }
  0x4f   : > { %1030 = dma.done.wait (%p1151_p8), %s290_s22, 160  }
  0x50   : > { %1032 = vsyncadd (%p1151_p8), %s290_s22, 4294967136  ;;  %s743_s13 = sshll.u32 %s1234_s1, 1  ;;  %v1070_v0 = vmov 0.0   ;;  %vm361_vm0 = vcmask 1041408   ;;  %v355_v1 = vld [vmem:[%s293_s9] sm:$0x3] }
  0x51   : > { %s1248_s26 = scalar_lea.vmem [#allocation8], %s743_s13  ;;  %s1251_s5 = scalar_lea.vmem [#allocation9], %s743_s13  ;;  %v356_v2 = vld [vmem:[%s293_s9 + $0x2] sm:$0x3]  ;;  %v357_v3 = vld [vmem:[%s293_s9 + $0x4] sm:$0x3] }
  0x52   : > { %349 = vst [vmem:[%s1248_s26] sm:$0x3] %v1070_v0  ;;  %350 = vst [vmem:[%s1251_s5] sm:$0x3] %v1070_v0  ;;  %v358_v4 = vld [vmem:[%s293_s9 + $0x6] sm:$0x3]  ;;  %v362_v5 = vsel %vm361_vm0, %v355_v1, -inf  ;;  %v363_v6 = vsel %vm361_vm0, %v356_v2, -inf }
  0x53   : > { %v364_v7 = vsel %vm361_vm0, %v357_v3, -inf  ;;  %v365_v8 = vsel %vm361_vm0, %v358_v4, -inf  ;;  %v366_v9 = vmax.f32 %v362_v5, %v363_v6  ;;  %v351_v10 = vld [vmem:[%s284_s11] sm:$0x3]  ;;  %v1258_v11 = vld [vmem:[%s284_s11 + $0x2] sm:$0x3] }
  0x54   : > { %v367_v12 = vmax.f32 %v364_v7, %v365_v8  ;;  %v1260_v13 = vld [vmem:[%s284_s11 + $0x4] sm:$0x3]  ;;  %v1262_v14 = vld [vmem:[%s284_s11 + $0x6] sm:$0x3]  ;;  %s302_s21 = scalar_lea.vmem [#allocation7], %s743_s13  ;;  %v402_v17 = vsel %vm361_vm0, %v351_v10, -inf }
  0x55   : > { %v1264_v16 = vld [vmem:[%s302_s21] sm:$0x3]  ;;  %v403_v18 = vsel %vm361_vm0, %v1258_v11, -inf  ;;  %v404_v19 = vsel %vm361_vm0, %v1260_v13, -inf  ;;  %v405_v20 = vsel %vm361_vm0, %v1262_v14, -inf  ;;  %s749_s27 = sshll.u32 %s1055_s18, 5 }
  0x56   : > { %v368_v15 = vmax.f32 %v366_v9, %v367_v12  ;;  %vm360_vm1 = vcmp.ne.s32.totalorder %v1264_v16, 255  ;;  %v406_v22 = vmax.f32 %v402_v17, %v403_v18  ;;  %s562_s6 = sshll.u32 %s1251_s5, 4  ;;  %v1071_v27 = vmov 4   ;;  %s1284_s25 = scalar_lea.hbm %s1409_s4, %s749_s27  ;;  %s1286_s6 = int_to_ptr.vmem [resolvable:$true] %s562_s6 }
  0x57   : > { %v746_v25 = vsel %vm360_vm1, 1.0, %v1070_v0  ;;  %v407_v31 = vmax.f32 %v404_v19, %v405_v20  ;;  %s534_s10 = scalar_lea.sflag [#allocation10], %s1234_s1  ;;  %s949_s12 = scalar_lea.vmem %s1286_s6, 32 }
  0x58   : > { %vm369_vm2 = vcmp.eq.f32.partialorder %v355_v1, %v368_v15  ;;  %vm370_vm3 = vcmp.eq.f32.partialorder %v356_v2, %v368_v15  ;;  %vm371_vm4 = vcmp.eq.f32.partialorder %v357_v3, %v368_v15  ;;  %vm372_vm5 = vcmp.eq.f32.partialorder %v358_v4, %v368_v15  ;;  %p950_p8 = scmp.ne.s32.totalorder %s1286_s6, %s949_s12  ;;  %s1072_s17 = smov [#allocation9]  }
  0x59   : > { %v398_v21 = vsub.f32 %v355_v1, %v368_v15  ;;  %v399_v23 = vsub.f32 %v356_v2, %v368_v15  ;;  %v400_v24 = vsub.f32 %v357_v3, %v368_v15  ;;  %v523_v26 = vld [vmem:[%s1251_s5] sm:$0x3]  ;;  %v373_v28 = vsel %vm369_vm2, 0, %v1071_v27  ;;  %s953_s20 = sshll.u32 %s1072_s17, 4  ;;  %s954_s20 = int_to_ptr.vmem [resolvable:$false] %s953_s20 }
  0x5a   : > { %v374_v29 = vsel %vm370_vm3, 1, %v1071_v27  ;;  %v401_v30 = vsub.f32 %v358_v4, %v368_v15  ;;  %v375_v32 = vsel %vm371_vm4, 2, %v1071_v27  ;;  %v376_v33 = vsel %vm372_vm5, 3, %v1071_v27  ;;  %p951_p0 = pnand %p950_p8, %p1155_p9  ;;  %s955_s14 = scalar_lea.vmem %s954_s20, 64 }
  0x5b   : > { %v413_v34 = vmul.f32 1.442695, %v398_v21  ;;  %v415_v35 = vmul.f32 1.442695, %v399_v23  ;;  %v408_v36 = vmax.f32 %v406_v22, %v407_v31  ;;  %v417_v37 = vmul.f32 1.442695, %v400_v24  ;;  %p956_p4 = scmp.lt.s32.totalorder %s1286_s6, %s954_s20  ;;  %p957_p10 = scmp.lt.s32.totalorder %s955_s14, %s949_s12 }
  0x5c   : > { %v526_v38 = vadd.f32 %v746_v25, %v523_v26  ;;  %v377_v39 = vsel %vm361_vm0, %v373_v28, 2147483647  ;;  %v419_v40 = vmul.f32 1.442695, %v401_v30  ;;  %v378_v41 = vsel %vm361_vm0, %v374_v29, 2147483647  ;;  %p952_p3 = pneg %p951_p0 }
  0x5d   : > { %837 = vpow2.f32 %v413_v34  ;;  %v379_v42 = vsel %vm361_vm0, %v375_v32, 2147483647  ;;  %v380_v43 = vsel %vm361_vm0, %v376_v33, 2147483647  ;;  %v1293_v44 = vsub.f32 %v351_v10, %v408_v36  ;;  %p958_p13 = por %p957_p10, %p956_p4 }
  0x5e   : > { %527 = vst [vmem:[%s1251_s5] sm:$0x3] %v526_v38  ;;  %839 = vpow2.f32 %v415_v35 }
  0x5f   : > { %p959_p12 = pnand %p958_p13, %p952_p3 }
  0x61   : > { %962 = shalt.err (!%p959_p12)
}
  0x62   : > { %s963_s23 = scalar_lea.hbm %s1284_s25, 32  ;;  %s967_s8 = scalar_lea.hbm %s1409_s4, 64 }
  0x63   : > { %p964_p5 = scmp.ne.s32.totalorder %s1284_s25, %s963_s23  ;;  %p968_p6 = scmp.lt.s32.totalorder %s1284_s25, %s1409_s4 }
  0x64   : > { %p969_p7 = scmp.lt.s32.totalorder %s967_s8, %s963_s23 }
  0x65   : > { %p965_p1 = pnand %p964_p5, %p1155_p9 }
  0x66   : > { %p970_p8 = por %p969_p7, %p968_p6 }
  0x67   : > { %p966_p2 = pneg %p965_p1 }
  0x69   : > { %p971_p0 = pnand %p970_p8, %p966_p2 }
  0x6b   : > { %974 = shalt.err (!%p971_p0)
}
  0x6c   : > { %762 = dma.vmem_to_hbm [thread:$0]  (%p1155_p9), %s1286_s6, 32, %s1284_s25, %s534_s10   ;;  %v1317_v45 = vsub.f32 %v1258_v11, %v408_v36  ;;  %841 = vpow2.f32 %v417_v37  ;;  %vm381_vm6 = vcmp.lt.s32.totalorder %v377_v39, %v378_v41  ;;  %vm383_vm7 = vcmp.lt.s32.totalorder %v379_v42, %v380_v43  ;;  %v838_v53 = vpop.eup %837 }
  0x6d   : > { %843 = vpow2.f32 %v419_v40  ;;  %v470_v46 = vmul.f32 1.442695, %v1293_v44  ;;  %v382_v47 = vsel %vm381_vm6, %v377_v39, %v378_v41  ;;  %v384_v48 = vsel %vm383_vm7, %v379_v42, %v380_v43  ;;  %v840_v56 = vpop.eup %839  ;;  %s548_s13 = sshll.u32 %s1248_s26, 4  ;;  %s546_s6 = scalar_lea.hbm %s1408_s3, %s749_s27  ;;  %s549_s13 = int_to_ptr.vmem [resolvable:$true] %s548_s13 }
  0x6e   : > { %v1321_v49 = vsub.f32 %v1260_v13, %v408_v36  ;;  %v472_v50 = vmul.f32 1.442695, %v1317_v45  ;;  %vm385_vm8 = vcmp.lt.s32.totalorder %v382_v47, %v384_v48  ;;  %v1325_v51 = vsub.f32 %v1262_v14, %v408_v36  ;;  %s529_s7 = scalar_lea.sflag [#allocation4], %s1234_s1  ;;  %s975_s24 = scalar_lea.vmem %s549_s13, 32 }
  0x6f   : > { %845 = vpow2.f32 %v470_v46  ;;  %v1328_v54 = vsel %vm385_vm8, %v382_v47, %v384_v48  ;;  %v421_v55 = vsel %vm361_vm0, %v838_v53, 0.0  ;;  %v422_v59 = vsel %vm361_vm0, %v840_v56, 0.0  ;;  %p976_p3 = scmp.ne.s32.totalorder %s549_s13, %s975_s24  ;;  %s1074_s25 = smov [#allocation8]  }
  0x70   : > { %847 = vpow2.f32 %v472_v50  ;;  %v474_v52 = vmul.f32 1.442695, %v1321_v49  ;;  %v476_v57 = vmul.f32 1.442695, %v1325_v51  ;;  %vm434_vm9 = vcmp.eq.s32.totalorder %v1328_v54, 0  ;;  %s979_s10 = sshll.u32 %s1074_s25, 4  ;;  %s980_s10 = int_to_ptr.vmem [resolvable:$false] %s979_s10 }
  0x71   : > { %vm435_vm10 = vcmp.eq.s32.totalorder %v1328_v54, 1  ;;  %v423_v61 = vadd.f32 %v422_v59, %v421_v55  ;;  %vm436_vm11 = vcmp.eq.s32.totalorder %v1328_v54, 2  ;;  %vm437_vm12 = vcmp.eq.s32.totalorder %v1328_v54, 3  ;;  %p977_p4 = pnand %p976_p3, %p1155_p9  ;;  %s981_s12 = scalar_lea.vmem %s980_s10, 64 }
  0x72   : > { %849 = vpow2.f32 %v474_v52  ;;  %v438_v1 = vsel %vm434_vm9, -inf, %v838_v53  ;;  %v439_v2 = vsel %vm435_vm10, -inf, %v840_v56  ;;  %vm388_vm13 = vcmp.eq.s32.totalorder %v1264_v16, 255  ;;  %p982_p13 = scmp.lt.s32.totalorder %s549_s13, %s980_s10  ;;  %p983_p12 = scmp.lt.s32.totalorder %s981_s12, %s975_s24 }
  0x73   : > { %851 = vpow2.f32 %v476_v57  ;;  %v442_v6 = vsel %vm361_vm0, %v438_v1, -inf  ;;  %v443_v8 = vsel %vm361_vm0, %v439_v2, -inf  ;;  %v389_v22 = vsel %vm388_vm13, 0, %v1264_v16  ;;  %p978_p10 = pneg %p977_p4 }
  0x74   : > { %v446_v12 = vmax.f32 %v442_v6, %v443_v8  ;;  %vm390_vm14 = vcmp.eq.s32.totalorder %v389_v22, 0  ;;  %vm391_vm15 = vcmp.eq.s32.totalorder %v389_v22, 1  ;;  %vm392_vm2 = vcmp.eq.s32.totalorder %v389_v22, 2  ;;  %p984_p5 = por %p983_p12, %p982_p13 }
  0x75   : > { %vm393_vm3 = vcmp.eq.s32.totalorder %v389_v22, 3  ;;  %v1073_v33 = vmov 0.0125   ;;  %vm387_vm4 = vcmp.ne.s32.totalorder %v1264_v16, %v1328_v54 }
  0x76   : > { %v394_v34 = vsel %vm390_vm14, 0.95, %v1073_v33  ;;  %v395_v35 = vsel %vm391_vm15, 0.95, %v1073_v33  ;;  %v396_v36 = vsel %vm392_vm2, 0.95, %v1073_v33  ;;  %p985_p1 = pnand %p984_p5, %p978_p10 }
  0x77   : > { %v397_v37 = vsel %vm393_vm3, 0.95, %v1073_v33 }
  0x79   : > { %v842_v58 = vpop.eup %841 }
  0x7a   : > { %v844_v60 = vpop.eup %843  ;;  %v424_v62 = vsel %vm361_vm0, %v842_v58, 0.0  ;;  %v440_v3 = vsel %vm436_vm11, -inf, %v842_v58 }
  0x7b   : > { %v426_v63 = vsel %vm361_vm0, %v844_v60, 0.0  ;;  %v425_v0 = vadd.f32 %v424_v62, %v423_v61  ;;  %v441_v4 = vsel %vm437_vm12, -inf, %v844_v60  ;;  %v444_v9 = vsel %vm361_vm0, %v440_v3, -inf }
  0x7c   : > { %v846_v7 = vpop.eup %845  ;;  %v445_v10 = vsel %vm361_vm0, %v441_v4, -inf }
  0x7d   : > { %v427_v5 = vadd.f32 %v426_v63, %v425_v0  ;;  %v848_v11 = vpop.eup %847  ;;  %v447_v13 = vmax.f32 %v444_v9, %v445_v10  ;;  %v478_v14 = vsel %vm361_vm0, %v846_v7, 0.0 }
  0x7e   : > { %v479_v15 = vsel %vm361_vm0, %v848_v11, 0.0 }
  0x7f   : > { %853 = vrcp.f32 %v427_v5  ;;  %v850_v17 = vpop.eup %849  ;;  %v448_v18 = vmax.f32 %v446_v12, %v447_v13  ;;  %v480_v19 = vadd.f32 %v479_v15, %v478_v14 }
  0x80   : > { %v481_v20 = vsel %vm361_vm0, %v850_v17, 0.0  ;;  %v852_v21 = vpop.eup %851 }
  0x81   : > { %v449_v23 = vsub.f32 1.0, %v448_v18  ;;  %v482_v24 = vadd.f32 %v481_v20, %v480_v19  ;;  %v483_v25 = vsel %vm361_vm0, %v852_v21, 0.0 }
  0x83   : > { %v484_v32 = vadd.f32 %v483_v25, %v482_v24 }
  0x85   : > { %855 = vlog2.f32 %v484_v32 }
  0x8c   : > { %v854_v26 = vpop.eup %853 }
  0x8d   : > { %v430_v27 = vmul.f32 %v854_v26, %v838_v53  ;;  %v431_v28 = vmul.f32 %v854_v26, %v840_v56  ;;  %v432_v29 = vmul.f32 %v854_v26, %v842_v58  ;;  %v433_v30 = vmul.f32 %v854_v26, %v844_v60 }
  0x8e   : > { %v450_v31 = vmul.f32 %v854_v26, %v449_v23  ;;  %v519_v26 = vld [vmem:[%s1248_s26] sm:$0x3] }
  0x90   : > { %v451_v38 = vmul.f32 %v450_v31, %v430_v27  ;;  %v452_v39 = vmul.f32 %v450_v31, %v431_v28  ;;  %v453_v40 = vmul.f32 %v450_v31, %v432_v29  ;;  %v454_v41 = vmul.f32 %v450_v31, %v433_v30 }
  0x91   : > { %v455_v42 = vsub.f32 1.0, %v450_v31 }
  0x92   : > { %v856_v0 = vpop.eup %855 }
  0x93   : > { %v456_v43 = vmul.f32 %v455_v42, %v394_v34  ;;  %v457_v46 = vmul.f32 %v455_v42, %v395_v35  ;;  %v458_v47 = vmul.f32 %v455_v42, %v396_v36  ;;  %v459_v48 = vmul.f32 %v455_v42, %v397_v37 }
  0x94   : > { %v486_v1 = vmul.f32 0.6931472, %v856_v0 }
  0x95   : > { %v460_v50 = vadd.f32 %v456_v43, %v451_v38  ;;  %v461_v52 = vadd.f32 %v457_v46, %v452_v39  ;;  %v462_v53 = vadd.f32 %v458_v47, %v453_v40  ;;  %v463_v55 = vadd.f32 %v459_v48, %v454_v41 }
  0x96   : > { %v487_v54 = vsub.f32 %v1293_v44, %v486_v1  ;;  %v488_v3 = vsub.f32 %v1317_v45, %v486_v1  ;;  %v489_v5 = vsub.f32 %v1321_v49, %v486_v1  ;;  %v490_v8 = vsub.f32 %v1325_v51, %v486_v1 }
  0x97   : > { %v466_v56 = vsel %vm387_vm4, %v460_v50, %v430_v27  ;;  %v467_v57 = vsel %vm387_vm4, %v461_v52, %v431_v28  ;;  %v468_v58 = vsel %vm387_vm4, %v462_v53, %v432_v29  ;;  %v469_v59 = vsel %vm387_vm4, %v463_v55, %v433_v30 }
  0x98   : > { %v491_v60 = vmax.f32 %v466_v56, 1e-30  ;;  %v492_v61 = vmax.f32 %v467_v57, 1e-30  ;;  %v493_v62 = vmax.f32 %v468_v58, 1e-30 }
  0x99   : > { %v494_v63 = vmax.f32 %v469_v59, 1e-30 }
  0x9a   : > { %857 = vlog2.f32 %v491_v60 }
  0x9b   : > { %859 = vlog2.f32 %v492_v61 }
  0x9c   : > { %861 = vlog2.f32 %v493_v62 }
  0x9d   : > { %863 = vlog2.f32 %v494_v63 }
  0xa7   : > { %v858_v2 = vpop.eup %857 }
  0xa8   : > { %v860_v4 = vpop.eup %859  ;;  %v496_v6 = vmul.f32 0.6931472, %v858_v2 }
  0xa9   : > { %v862_v7 = vpop.eup %861  ;;  %v498_v9 = vmul.f32 0.6931472, %v860_v4 }
  0xaa   : > { %v864_v10 = vpop.eup %863  ;;  %v500_v11 = vmul.f32 0.6931472, %v862_v7  ;;  %v503_v12 = vsub.f32 %v496_v6, %v487_v54 }
  0xab   : > { %v502_v13 = vmul.f32 0.6931472, %v864_v10  ;;  %v504_v14 = vsub.f32 %v498_v9, %v488_v3 }
  0xac   : > { %v505_v15 = vsub.f32 %v500_v11, %v489_v5  ;;  %v507_v44 = vmul.f32 %v503_v12, %v466_v56 }
  0xad   : > { %v506_v17 = vsub.f32 %v502_v13, %v490_v8  ;;  %v508_v45 = vmul.f32 %v504_v14, %v467_v57 }
  0xae   : > { %v509_v18 = vmul.f32 %v505_v15, %v468_v58  ;;  %v511_v49 = vsel %vm361_vm0, %v507_v44, 0.0 }
  0xaf   : > { %v510_v19 = vmul.f32 %v506_v17, %v469_v59  ;;  %v512_v51 = vsel %vm361_vm0, %v508_v45, 0.0 }
  0xb0   : > { %v513_v20 = vadd.f32 %v512_v51, %v511_v49  ;;  %v514_v21 = vsel %vm361_vm0, %v509_v18, 0.0 }
  0xb1   : > { %v516_v22 = vsel %vm361_vm0, %v510_v19, 0.0 }
  0xb2   : > { %v515_v23 = vadd.f32 %v514_v21, %v513_v20 }
  0xb4   : > { %v517_v24 = vadd.f32 %v516_v22, %v515_v23 }
  0xb6   : > { %v518_v25 = vmul.f32 0.25, %v517_v24 }
  0xb8   : > { %v520_v27 = vsel %vm360_vm1, %v518_v25, 0.0 }
  0xb9   : > { %v521_v28 = vadd.f32 %v520_v27, %v519_v26 }
  0xbb   : > { %522 = vst [vmem:[%s1248_s26] sm:$0x3] %v521_v28 }
  0xbc   : > { %988 = shalt.err (!%p985_p1)
}
  0xbd   : > { %s989_s18 = scalar_lea.hbm %s546_s6, 32  ;;  %s993_s27 = scalar_lea.hbm %s1408_s3, 64 }
  0xbe   : > { %p990_p2 = scmp.ne.s32.totalorder %s546_s6, %s989_s18  ;;  %p994_p8 = scmp.lt.s32.totalorder %s546_s6, %s1408_s3 }
  0xbf   : > { %p995_p0 = scmp.lt.s32.totalorder %s993_s27, %s989_s18 }
  0xc0   : > { %p991_p6 = pnand %p990_p2, %p1155_p9 }
  0xc1   : > { %p996_p3 = por %p995_p0, %p994_p8 }
  0xc2   : > { %p992_p7 = pneg %p991_p6 }
  0xc4   : > { %p997_p4 = pnand %p996_p3, %p992_p7 }
  0xc6   : > { %1000 = shalt.err (!%p997_p4)
}
  0xc7   : > { %761 = dma.vmem_to_hbm [thread:$0]  (%p1155_p9), %s549_s13, 32, %s546_s6, %s529_s7  }
  0xc8 PF: > { %s1426_s14 = sld [smem:[#allocation16_spill]]  ;;  %s574_s23 = sand.u32 1, %s1043_s15  }
  0xc9   : > { %s575_s29 = scalar_lea.sflag [#allocation4], %s574_s23 }
  0xce   : > { %p1427_p10 = scmp.ge.s32.totalorder %s1426_s14, 2 }
  0xd0   : > { %p776_p13 = pnand %p1427_p10, %p1162_p11 }
  0xd2   : > { %p777_p12 = pneg %p776_p13 }
  0xd4   : > { %1034 = dma.done.wait (%p777_p12), %s575_s29, 32  }
  0xd5   : > { %1036 = vsyncadd (%p777_p12), %s575_s29, 4294967264  ;;  %s584_s11 = scalar_lea.sflag [#allocation10], %s574_s23 }
  0xd6   : > { %1038 = dma.done.wait (%p777_p12), %s584_s11, 32  }
  0xd7   : > { %1040 = vsyncadd (%p777_p12), %s584_s11, 4294967264  ;;  %s27_s20 = sadd.s32 1, %s1426_s14   ;;  %s1428_s28 = sld [smem:[#allocation15_spill]] }
  0xd8   : > { %p24_p5 = scmp.ge.s32.totalorder %s27_s20, 4   ;;  %s1429_s17 = sld [smem:[#allocation18_spill]] }
  0xd9   : > { %s1430_s8 = sld [smem:[#allocation17_spill]]  ;;  %s1431_s15 = smov %s1047_s16 }
  0xda   : > { %s1433_s18 = smov %s1059_s19 }
  0xdb   :  { %26 = sbr.rel (!%p24_p5) target bundleno = 12 (0xc), region = 122 }
  0xdd   : > { %s1432_s16 = smov %s1428_s28 }
  0xdf   : > { %s1434_s19 = smov %s1430_s8 }
  0xe0   :  { %589 = vsyncpa [#allocation3], 1 }
  0xe1   :  { %591 = vsyncpa [#allocation3 + $0x1], 1 }
  0xe2   :  { %592 = vsyncpa [#allocation6], 1 }
  0xe3   :  { %594 = vsyncpa [#allocation6 + $0x1], 1 }
  0xe4   :  { %595 = vsyncpa [#allocation4], 1 }
  0xe5   :  { %597 = vsyncpa [#allocation4 + $0x1], 1 }
  0xe6   :  { %598 = vsyncpa [#allocation10], 1 }
  0xe7   :  { %600 = vsyncpa [#allocation10 + $0x1], 1 }

</bundles_post_ra>
